<compile_context>
chip_gen: v5e
topology: v5e:2x2
jax: 0.10.0
libtpu: 0.0.40
codegen_flags: <defaults>
</compile_context>

<pallas_src>
import jax
import jax.numpy as jnp
from jax import lax
from jax.experimental import pallas as pl
from jax.experimental.pallas import tpu as pltpu

# Scaled-down, deterministic channel configuration (ARGS['encoder']*expansion etc.)
B, H, W = 2, 16, 16
H2, W2 = H // 2, W // 2
C1, C2 = 8, 16       # in_1_channels, in_2_channels
E = 8                # out_edge_channels  (ARGS['egm'][0])
COUT = 16            # out_channels       (ARGS['egm'][1] * expansion)
EPS = 1e-5
HW = H * W
HW4 = H2 * W2
BHW = B * HW
CIN = C1 + C2


def _egm_kernel(x1_ref, x2_ref, up_ref, mask_ref, w_in_ref, b_in_ref,
                w3_ref, b3_ref, wh_ref, edge_ref, out_ref):
    """Single grid step: whole batch, channels-major (C, B*H*W) activations."""
    # Lane-dense channels-major inputs: rows = channels, lanes = pixels.
    x1 = jnp.concatenate([x1_ref[b] for b in range(B)], axis=-1)        # (C1, BHW)
    # Fused bilinear 2x upsample: (C2, HW/4) @ (HW/4, HW) per image on the MXU.
    x2 = jnp.concatenate(
        [jnp.dot(x2_ref[b], up_ref[...], preferred_element_type=jnp.float32)
         for b in range(B)], axis=-1)                                   # (C2, BHW)
    xin = jnp.concatenate([x1, x2], axis=0)                             # (CIN, BHW)

    # Fused 1x1 convs (+ folded BN) + ReLU for both branches.
    t = jnp.dot(w_in_ref[...], xin, preferred_element_type=jnp.float32)
    t = jnp.maximum(t + b_in_ref[...], 0.0)                             # (2E, BHW)

    # 3x3 conv (padding=1) as one im2col matmul: 9 shifted copies of t,
    # boundary wrap zeroed with precomputed per-tap masks.
    cols = []
    for k in range(9):
        dy, dx = k // 3 - 1, k % 3 - 1
        s = dy * W + dx
        if s == 0:
            col = t
        else:
            col = jnp.roll(t, -s, axis=1) * mask_ref[k]                 # (2E, BHW)
        cols.append(col)
    im2col = jnp.concatenate(cols, axis=0)                              # (18E, BHW)

    f = jnp.dot(w3_ref[...], im2col, preferred_element_type=jnp.float32)
    f = jnp.maximum(f + b3_ref[...], 0.0)                               # (2E, BHW) = [f1; f2]

    # Fused output heads: rows [0:E] = edge conv, rows [E:E+COUT] = out conv.
    heads = jnp.dot(wh_ref[...], f, preferred_element_type=jnp.float32)  # (E+COUT, BHW)

    for b in range(B):
        sl = slice(b * HW, (b + 1) * HW)
        edge_ref[b] = heads[:E, sl]
        out_ref[b] = heads[E:, sl]


def _full_spec(shape):
    n = len(shape)
    return pl.BlockSpec(shape, lambda i, n=n: (0,) * n)


def _fold_bn(w, bn):
    gamma, beta, mean, var = bn
    scale = gamma / jnp.sqrt(var + EPS)
    return w * scale, beta - mean * scale


def _shift_masks():
    """(9, 1, BHW) f32 masks zeroing the lane-roll wraparound per 3x3 tap."""
    pos = jnp.arange(BHW, dtype=jnp.int32)
    y = (pos % HW) // W
    x = pos % W
    rows = []
    for k in range(9):
        dy, dx = k // 3 - 1, k % 3 - 1
        m = jnp.ones((BHW,), jnp.bool_)
        if dy < 0:
            m = m & (y >= -dy)
        elif dy > 0:
            m = m & (y < H - dy)
        if dx < 0:
            m = m & (x >= -dx)
        elif dx > 0:
            m = m & (x < W - dx)
        rows.append(m)
    return jnp.stack(rows).astype(jnp.float32).reshape(9, 1, BHW)


@jax.jit
def edge_guidance_module(x1_nchw, x2_nchw, params):
    (w1a, bn1a, w13, bn1b, w2a, bn2a, w23, bn2b, we, wo) = params

    x1 = x1_nchw.astype(jnp.float32).reshape(B, C1, HW)
    x2 = x2_nchw.astype(jnp.float32).reshape(B, C2, HW4)

    # Bilinear 2x upsample (align_corners=False) as a constant (HW4, HW)
    # operator: resize the identity basis once (constant-folded by XLA),
    # so the upsample becomes an in-kernel matmul identical to jax.image.resize.
    up_t = jax.image.resize(
        jnp.eye(HW4, dtype=jnp.float32).reshape(HW4, H2, W2),
        (HW4, H, W), method='bilinear').reshape(HW4, HW)

    masks = _shift_masks()                                              # (9, 1, BHW)

    # Fold eval-mode BN into the convs.
    w1a_f, b1a_f = _fold_bn(w1a, bn1a)          # (C1,E), (E,)
    w13_f, b13_f = _fold_bn(w13, bn1b)          # (3,3,E,E) HWIO, (E,)
    w2a_f, b2a_f = _fold_bn(w2a, bn2a)
    w23_f, b23_f = _fold_bn(w23, bn2b)

    # Fused block-diagonal 1x1 weights: (2E, C1+C2), bias (2E, 1).
    w_in = jnp.zeros((2 * E, CIN), jnp.float32)
    w_in = w_in.at[:E, :C1].set(w1a_f.T)
    w_in = w_in.at[E:, C1:].set(w2a_f.T)
    b_in = jnp.concatenate([b1a_f, b2a_f]).reshape(2 * E, 1)

    # Fused 3x3 im2col weights: per-tap block-diag, concat along K -> (2E, 18E).
    w13_t = w13_f.reshape(9, E, E)              # (tap, cin, cout)
    w23_t = w23_f.reshape(9, E, E)
    blocks = []
    for k in range(9):
        blk = jnp.zeros((2 * E, 2 * E), jnp.float32)
        blk = blk.at[:E, :E].set(w13_t[k].T)
        blk = blk.at[E:, E:].set(w23_t[k].T)
        blocks.append(blk)
    w3_blk = jnp.concatenate(blocks, axis=1)    # (2E, 18E)
    b3 = jnp.concatenate([b13_f, b23_f]).reshape(2 * E, 1)

    # Fused output heads: (E+COUT, 2E), bias-free per the module.
    w_heads = jnp.concatenate([we.T, wo.T], axis=0)

    in_specs = [
        _full_spec((B, C1, HW)),
        _full_spec((B, C2, HW4)),
        _full_spec((HW4, HW)),
        _full_spec((9, 1, BHW)),
        _full_spec((2 * E, CIN)),
        _full_spec((2 * E, 1)),
        _full_spec((2 * E, 18 * E)),
        _full_spec((2 * E, 1)),
        _full_spec((E + COUT, 2 * E)),
    ]
    out_specs = [
        _full_spec((B, E, HW)),
        _full_spec((B, COUT, HW)),
    ]

    edge, out = pl.pallas_call(
        _egm_kernel,
        out_shape=(jax.ShapeDtypeStruct((B, E, HW), jnp.float32),
                   jax.ShapeDtypeStruct((B, COUT, HW), jnp.float32)),
        grid_spec=pltpu.PrefetchScalarGridSpec(
            num_scalar_prefetch=0,
            grid=(1,),
            in_specs=in_specs,
            out_specs=out_specs),
        compiler_params=pltpu.CompilerParams(
            dimension_semantics=("arbitrary",)),
    )(x1, x2, up_t, masks, w_in, b_in, w3_blk, b3, w_heads)

    # Lane-dense (B, C, HW) -> NCHW via pure reshape (no transpose).
    return edge.reshape(B, E, H, W), out.reshape(B, COUT, H, W)


def _ref_forward(x1_nchw, x2_nchw, params):
    """Pure-JAX NCHW reference (standard convs, explicit eval-mode BN)."""
    (w1a, bn1a, w13, bn1b, w2a, bn2a, w23, bn2b, we, wo) = params
    x1 = x1_nchw.astype(jnp.float32)
    x2u = jax.image.resize(x2_nchw.astype(jnp.float32), (B, C2, H, W),
                           method='bilinear')

    def bn_relu(v, bn):
        gamma, beta, mean, var = [p.reshape(1, -1, 1, 1) for p in bn]
        return jnp.maximum((v - mean) / jnp.sqrt(var + EPS) * gamma + beta, 0.0)

    def conv1x1(v, w):                      # w: (Cin, Cout)
        return jnp.einsum('bchw,cd->bdhw', v, w)

    def conv3x3(v, w):                      # w: HWIO
        return lax.conv_general_dilated(
            v, w, (1, 1), 'SAME', dimension_numbers=('NCHW', 'HWIO', 'NCHW'))

    f1 = bn_relu(conv3x3(bn_relu(conv1x1(x1, w1a), bn1a), w13), bn1b)
    f2 = bn_relu(conv3x3(bn_relu(conv1x1(x2u, w2a), bn2a), w23), bn2b)
    cat = jnp.concatenate([f1, f2], axis=1)
    return conv1x1(cat, we), conv1x1(cat, wo)


def _make_params(key):
    ks = jax.random.split(key, 10)

    def bn(k, c):
        k1, k2, k3, k4 = jax.random.split(k, 4)
        gamma = 1.0 + 0.1 * jax.random.normal(k1, (c,), jnp.float32)
        beta = 0.1 * jax.random.normal(k2, (c,), jnp.float32)
        mean = 0.1 * jax.random.normal(k3, (c,), jnp.float32)
        var = 0.5 + 0.1 * jnp.abs(jax.random.normal(k4, (c,), jnp.float32))
        return (gamma, beta, mean, var)

    w1a = 0.2 * jax.random.normal(ks[0], (C1, E), jnp.float32)        # 1x1: (Cin, Cout)
    w13 = 0.2 * jax.random.normal(ks[1], (3, 3, E, E), jnp.float32)   # 3x3: HWIO
    w2a = 0.2 * jax.random.normal(ks[2], (C2, E), jnp.float32)
    w23 = 0.2 * jax.random.normal(ks[3], (3, 3, E, E), jnp.float32)
    we = 0.2 * jax.random.normal(ks[4], (2 * E, E), jnp.float32)
    wo = 0.2 * jax.random.normal(ks[5], (2 * E, COUT), jnp.float32)
    return (w1a, bn(ks[6], E), w13, bn(ks[7], E),
            w2a, bn(ks[8], E), w23, bn(ks[9], E), we, wo)


if __name__ == "__main__":
    key = jax.random.PRNGKey(0)
    k1, k2, k3 = jax.random.split(key, 3)
    x1 = jax.random.normal(k1, (B, C1, H, W), jnp.float32)             # NCHW
    x2 = jax.random.normal(k2, (B, C2, H // 2, W // 2), jnp.float32)   # NCHW (half res)
    params = _make_params(k3)

    edge, out = edge_guidance_module(x1, x2, params)
    jax.block_until_ready((edge, out))

    edge_ref, out_ref = _ref_forward(x1, x2, params)
    assert edge.shape == (B, E, H, W) and out.shape == (B, COUT, H, W)
    assert jnp.allclose(edge, edge_ref, atol=3e-2, rtol=3e-2), \
        float(jnp.max(jnp.abs(edge - edge_ref)))
    assert jnp.allclose(out, out_ref, atol=3e-2, rtol=3e-2), \
        float(jnp.max(jnp.abs(out - out_ref)))
    print("KERNEL_OK")
</pallas_src>

<mosaic_0001>
module attributes {stable_mosaic.version = 11 : i64} {
  func.func @_egm_kernel(%arg0: i32, %arg1: memref<2x8x256xf32, #tpu.memory_space<vmem>>, %arg2: memref<2x16x64xf32, #tpu.memory_space<vmem>>, %arg3: memref<64x256xf32, #tpu.memory_space<vmem>>, %arg4: memref<9x1x512xf32, #tpu.memory_space<vmem>>, %arg5: memref<16x24xf32, #tpu.memory_space<vmem>>, %arg6: memref<16x1xf32, #tpu.memory_space<vmem>>, %arg7: memref<16x144xf32, #tpu.memory_space<vmem>>, %arg8: memref<16x1xf32, #tpu.memory_space<vmem>>, %arg9: memref<24x16xf32, #tpu.memory_space<vmem>>, %arg10: memref<2x8x256xf32, #tpu.memory_space<vmem>>, %arg11: memref<2x16x256xf32, #tpu.memory_space<vmem>>) attributes {dimension_semantics = [#tpu.dimension_semantics<arbitrary>], iteration_bounds = array<i64: 1>, scalar_prefetch = 0 : i64, scratch_operands = 0 : i64, tpu.core_type = #tpu.core_type<tc>, window_params = [{pipeline_mode = #tpu.pipeline_mode<synchronous>, transform_indices = @transform_0, window_bounds = array<i64: 2, 8, 256>}, {pipeline_mode = #tpu.pipeline_mode<synchronous>, transform_indices = @transform_1, window_bounds = array<i64: 2, 16, 64>}, {pipeline_mode = #tpu.pipeline_mode<synchronous>, transform_indices = @transform_2, window_bounds = array<i64: 64, 256>}, {pipeline_mode = #tpu.pipeline_mode<synchronous>, transform_indices = @transform_3, window_bounds = array<i64: 9, 1, 512>}, {pipeline_mode = #tpu.pipeline_mode<synchronous>, transform_indices = @transform_4, window_bounds = array<i64: 16, 24>}, {pipeline_mode = #tpu.pipeline_mode<synchronous>, transform_indices = @transform_5, window_bounds = array<i64: 16, 1>}, {pipeline_mode = #tpu.pipeline_mode<synchronous>, transform_indices = @transform_6, window_bounds = array<i64: 16, 144>}, {pipeline_mode = #tpu.pipeline_mode<synchronous>, transform_indices = @transform_7, window_bounds = array<i64: 16, 1>}, {pipeline_mode = #tpu.pipeline_mode<synchronous>, transform_indices = @transform_8, window_bounds = array<i64: 24, 16>}, {pipeline_mode = #tpu.pipeline_mode<synchronous>, transform_indices = @transform_9, window_bounds = array<i64: 2, 8, 256>}, {pipeline_mode = #tpu.pipeline_mode<synchronous>, transform_indices = @transform_10, window_bounds = array<i64: 2, 16, 256>}]} {
    %c0 = arith.constant 0 : index
    %c0_0 = arith.constant 0 : index
    %c0_1 = arith.constant 0 : index
    %0 = vector.load %arg1[%c0, %c0_0, %c0_1] : memref<2x8x256xf32, #tpu.memory_space<vmem>>, vector<1x8x256xf32>
    %1 = vector.shape_cast %0 : vector<1x8x256xf32> to vector<8x256xf32>
    %c1 = arith.constant 1 : index
    %c0_2 = arith.constant 0 : index
    %c0_3 = arith.constant 0 : index
    %2 = vector.load %arg1[%c1, %c0_2, %c0_3] : memref<2x8x256xf32, #tpu.memory_space<vmem>>, vector<1x8x256xf32>
    %3 = vector.shape_cast %2 : vector<1x8x256xf32> to vector<8x256xf32>
    %4 = tpu.concatenate %1, %3 in 1 : vector<8x256xf32>, vector<8x256xf32> -> vector<8x512xf32>
    %c0_4 = arith.constant 0 : index
    %c0_5 = arith.constant 0 : index
    %c0_6 = arith.constant 0 : index
    %5 = vector.load %arg2[%c0_4, %c0_5, %c0_6] : memref<2x16x64xf32, #tpu.memory_space<vmem>>, vector<1x16x64xf32>
    %6 = vector.shape_cast %5 : vector<1x16x64xf32> to vector<16x64xf32>
    %c0_7 = arith.constant 0 : index
    %c0_8 = arith.constant 0 : index
    %7 = vector.load %arg3[%c0_7, %c0_8] : memref<64x256xf32, #tpu.memory_space<vmem>>, vector<64x256xf32>
    %cst = arith.constant dense<0.000000e+00> : vector<16x256xf32>
    %8 = tpu.matmul %6, %7, %cst {dimension_numbers = #tpu.dot_dimension_numbers<[1], [0], [0], [1], [0, 0, 1, 1], [], []>} : vector<16x64xf32>, vector<64x256xf32>, vector<16x256xf32> -> vector<16x256xf32>
    %c1_9 = arith.constant 1 : index
    %c0_10 = arith.constant 0 : index
    %c0_11 = arith.constant 0 : index
    %9 = vector.load %arg2[%c1_9, %c0_10, %c0_11] : memref<2x16x64xf32, #tpu.memory_space<vmem>>, vector<1x16x64xf32>
    %10 = vector.shape_cast %9 : vector<1x16x64xf32> to vector<16x64xf32>
    %c0_12 = arith.constant 0 : index
    %c0_13 = arith.constant 0 : index
    %11 = vector.load %arg3[%c0_12, %c0_13] : memref<64x256xf32, #tpu.memory_space<vmem>>, vector<64x256xf32>
    %cst_14 = arith.constant dense<0.000000e+00> : vector<16x256xf32>
    %12 = tpu.matmul %10, %11, %cst_14 {dimension_numbers = #tpu.dot_dimension_numbers<[1], [0], [0], [1], [0, 0, 1, 1], [], []>} : vector<16x64xf32>, vector<64x256xf32>, vector<16x256xf32> -> vector<16x256xf32>
    %13 = tpu.concatenate %8, %12 in 1 : vector<16x256xf32>, vector<16x256xf32> -> vector<16x512xf32>
    %14 = tpu.concatenate %4, %13 in 0 : vector<8x512xf32>, vector<16x512xf32> -> vector<24x512xf32>
    %c0_15 = arith.constant 0 : index
    %c0_16 = arith.constant 0 : index
    %15 = vector.load %arg5[%c0_15, %c0_16] : memref<16x24xf32, #tpu.memory_space<vmem>>, vector<16x24xf32>
    %cst_17 = arith.constant dense<0.000000e+00> : vector<16x512xf32>
    %16 = tpu.matmul %15, %14, %cst_17 {dimension_numbers = #tpu.dot_dimension_numbers<[1], [0], [0], [1], [0, 0, 1, 1], [], []>} : vector<16x24xf32>, vector<24x512xf32>, vector<16x512xf32> -> vector<16x512xf32>
    %c0_18 = arith.constant 0 : index
    %c0_19 = arith.constant 0 : index
    %17 = vector.load %arg6[%c0_18, %c0_19] : memref<16x1xf32, #tpu.memory_space<vmem>>, vector<16x1xf32>
    %18 = vector.broadcast %17 : vector<16x1xf32> to vector<16x512xf32>
    %19 = arith.addf %16, %18 : vector<16x512xf32>
    %cst_20 = arith.constant 0.000000e+00 : f32
    %20 = vector.broadcast %cst_20 : f32 to vector<16x512xf32>
    %21 = arith.maximumf %19, %20 : vector<16x512xf32>
    %22 = vector.extract_strided_slice %21 {offsets = [0, 495], sizes = [16, 17], strides = [1, 1]} : vector<16x512xf32> to vector<16x17xf32>
    %23 = vector.extract_strided_slice %21 {offsets = [0, 0], sizes = [16, 495], strides = [1, 1]} : vector<16x512xf32> to vector<16x495xf32>
    %24 = tpu.concatenate %22, %23 in 1 : vector<16x17xf32>, vector<16x495xf32> -> vector<16x512xf32>
    %c0_21 = arith.constant 0 : index
    %c0_22 = arith.constant 0 : index
    %c0_23 = arith.constant 0 : index
    %25 = vector.load %arg4[%c0_21, %c0_22, %c0_23] : memref<9x1x512xf32, #tpu.memory_space<vmem>>, vector<1x1x512xf32>
    %26 = vector.shape_cast %25 : vector<1x1x512xf32> to vector<1x512xf32>
    %27 = vector.broadcast %26 : vector<1x512xf32> to vector<16x512xf32>
    %28 = arith.mulf %24, %27 : vector<16x512xf32>
    %29 = vector.extract_strided_slice %21 {offsets = [0, 496], sizes = [16, 16], strides = [1, 1]} : vector<16x512xf32> to vector<16x16xf32>
    %30 = vector.extract_strided_slice %21 {offsets = [0, 0], sizes = [16, 496], strides = [1, 1]} : vector<16x512xf32> to vector<16x496xf32>
    %31 = tpu.concatenate %29, %30 in 1 : vector<16x16xf32>, vector<16x496xf32> -> vector<16x512xf32>
    %c1_24 = arith.constant 1 : index
    %c0_25 = arith.constant 0 : index
    %c0_26 = arith.constant 0 : index
    %32 = vector.load %arg4[%c1_24, %c0_25, %c0_26] : memref<9x1x512xf32, #tpu.memory_space<vmem>>, vector<1x1x512xf32>
    %33 = vector.shape_cast %32 : vector<1x1x512xf32> to vector<1x512xf32>
    %34 = vector.broadcast %33 : vector<1x512xf32> to vector<16x512xf32>
    %35 = arith.mulf %31, %34 : vector<16x512xf32>
    %36 = vector.extract_strided_slice %21 {offsets = [0, 497], sizes = [16, 15], strides = [1, 1]} : vector<16x512xf32> to vector<16x15xf32>
    %37 = vector.extract_strided_slice %21 {offsets = [0, 0], sizes = [16, 497], strides = [1, 1]} : vector<16x512xf32> to vector<16x497xf32>
    %38 = tpu.concatenate %36, %37 in 1 : vector<16x15xf32>, vector<16x497xf32> -> vector<16x512xf32>
    %c2 = arith.constant 2 : index
    %c0_27 = arith.constant 0 : index
    %c0_28 = arith.constant 0 : index
    %39 = vector.load %arg4[%c2, %c0_27, %c0_28] : memref<9x1x512xf32, #tpu.memory_space<vmem>>, vector<1x1x512xf32>
    %40 = vector.shape_cast %39 : vector<1x1x512xf32> to vector<1x512xf32>
    %41 = vector.broadcast %40 : vector<1x512xf32> to vector<16x512xf32>
    %42 = arith.mulf %38, %41 : vector<16x512xf32>
    %43 = vector.extract_strided_slice %21 {offsets = [0, 511], sizes = [16, 1], strides = [1, 1]} : vector<16x512xf32> to vector<16x1xf32>
    %44 = vector.extract_strided_slice %21 {offsets = [0, 0], sizes = [16, 511], strides = [1, 1]} : vector<16x512xf32> to vector<16x511xf32>
    %45 = tpu.concatenate %43, %44 in 1 : vector<16x1xf32>, vector<16x511xf32> -> vector<16x512xf32>
    %c3 = arith.constant 3 : index
    %c0_29 = arith.constant 0 : index
    %c0_30 = arith.constant 0 : index
    %46 = vector.load %arg4[%c3, %c0_29, %c0_30] : memref<9x1x512xf32, #tpu.memory_space<vmem>>, vector<1x1x512xf32>
    %47 = vector.shape_cast %46 : vector<1x1x512xf32> to vector<1x512xf32>
    %48 = vector.broadcast %47 : vector<1x512xf32> to vector<16x512xf32>
    %49 = arith.mulf %45, %48 : vector<16x512xf32>
    %50 = vector.extract_strided_slice %21 {offsets = [0, 1], sizes = [16, 511], strides = [1, 1]} : vector<16x512xf32> to vector<16x511xf32>
    %51 = vector.extract_strided_slice %21 {offsets = [0, 0], sizes = [16, 1], strides = [1, 1]} : vector<16x512xf32> to vector<16x1xf32>
    %52 = tpu.concatenate %50, %51 in 1 : vector<16x511xf32>, vector<16x1xf32> -> vector<16x512xf32>
    %c5 = arith.constant 5 : index
    %c0_31 = arith.constant 0 : index
    %c0_32 = arith.constant 0 : index
    %53 = vector.load %arg4[%c5, %c0_31, %c0_32] : memref<9x1x512xf32, #tpu.memory_space<vmem>>, vector<1x1x512xf32>
    %54 = vector.shape_cast %53 : vector<1x1x512xf32> to vector<1x512xf32>
    %55 = vector.broadcast %54 : vector<1x512xf32> to vector<16x512xf32>
    %56 = arith.mulf %52, %55 : vector<16x512xf32>
    %57 = vector.extract_strided_slice %21 {offsets = [0, 15], sizes = [16, 497], strides = [1, 1]} : vector<16x512xf32> to vector<16x497xf32>
    %58 = vector.extract_strided_slice %21 {offsets = [0, 0], sizes = [16, 15], strides = [1, 1]} : vector<16x512xf32> to vector<16x15xf32>
    %59 = tpu.concatenate %57, %58 in 1 : vector<16x497xf32>, vector<16x15xf32> -> vector<16x512xf32>
    %c6 = arith.constant 6 : index
    %c0_33 = arith.constant 0 : index
    %c0_34 = arith.constant 0 : index
    %60 = vector.load %arg4[%c6, %c0_33, %c0_34] : memref<9x1x512xf32, #tpu.memory_space<vmem>>, vector<1x1x512xf32>
    %61 = vector.shape_cast %60 : vector<1x1x512xf32> to vector<1x512xf32>
    %62 = vector.broadcast %61 : vector<1x512xf32> to vector<16x512xf32>
    %63 = arith.mulf %59, %62 : vector<16x512xf32>
    %64 = vector.extract_strided_slice %21 {offsets = [0, 16], sizes = [16, 496], strides = [1, 1]} : vector<16x512xf32> to vector<16x496xf32>
    %65 = vector.extract_strided_slice %21 {offsets = [0, 0], sizes = [16, 16], strides = [1, 1]} : vector<16x512xf32> to vector<16x16xf32>
    %66 = tpu.concatenate %64, %65 in 1 : vector<16x496xf32>, vector<16x16xf32> -> vector<16x512xf32>
    %c7 = arith.constant 7 : index
    %c0_35 = arith.constant 0 : index
    %c0_36 = arith.constant 0 : index
    %67 = vector.load %arg4[%c7, %c0_35, %c0_36] : memref<9x1x512xf32, #tpu.memory_space<vmem>>, vector<1x1x512xf32>
    %68 = vector.shape_cast %67 : vector<1x1x512xf32> to vector<1x512xf32>
    %69 = vector.broadcast %68 : vector<1x512xf32> to vector<16x512xf32>
    %70 = arith.mulf %66, %69 : vector<16x512xf32>
    %71 = vector.extract_strided_slice %21 {offsets = [0, 17], sizes = [16, 495], strides = [1, 1]} : vector<16x512xf32> to vector<16x495xf32>
    %72 = vector.extract_strided_slice %21 {offsets = [0, 0], sizes = [16, 17], strides = [1, 1]} : vector<16x512xf32> to vector<16x17xf32>
    %73 = tpu.concatenate %71, %72 in 1 : vector<16x495xf32>, vector<16x17xf32> -> vector<16x512xf32>
    %c8 = arith.constant 8 : index
    %c0_37 = arith.constant 0 : index
    %c0_38 = arith.constant 0 : index
    %74 = vector.load %arg4[%c8, %c0_37, %c0_38] : memref<9x1x512xf32, #tpu.memory_space<vmem>>, vector<1x1x512xf32>
    %75 = vector.shape_cast %74 : vector<1x1x512xf32> to vector<1x512xf32>
    %76 = vector.broadcast %75 : vector<1x512xf32> to vector<16x512xf32>
    %77 = arith.mulf %73, %76 : vector<16x512xf32>
    %78 = tpu.concatenate %28, %35, %42, %49, %21, %56, %63, %70, %77 in 0 : vector<16x512xf32>, vector<16x512xf32>, vector<16x512xf32>, vector<16x512xf32>, vector<16x512xf32>, vector<16x512xf32>, vector<16x512xf32>, vector<16x512xf32>, vector<16x512xf32> -> vector<144x512xf32>
    %c0_39 = arith.constant 0 : index
    %c0_40 = arith.constant 0 : index
    %79 = vector.load %arg7[%c0_39, %c0_40] : memref<16x144xf32, #tpu.memory_space<vmem>>, vector<16x144xf32>
    %cst_41 = arith.constant dense<0.000000e+00> : vector<16x512xf32>
    %80 = tpu.matmul %79, %78, %cst_41 {dimension_numbers = #tpu.dot_dimension_numbers<[1], [0], [0], [1], [0, 0, 1, 1], [], []>} : vector<16x144xf32>, vector<144x512xf32>, vector<16x512xf32> -> vector<16x512xf32>
    %c0_42 = arith.constant 0 : index
    %c0_43 = arith.constant 0 : index
    %81 = vector.load %arg8[%c0_42, %c0_43] : memref<16x1xf32, #tpu.memory_space<vmem>>, vector<16x1xf32>
    %82 = vector.broadcast %81 : vector<16x1xf32> to vector<16x512xf32>
    %83 = arith.addf %80, %82 : vector<16x512xf32>
    %cst_44 = arith.constant 0.000000e+00 : f32
    %84 = vector.broadcast %cst_44 : f32 to vector<16x512xf32>
    %85 = arith.maximumf %83, %84 : vector<16x512xf32>
    %c0_45 = arith.constant 0 : index
    %c0_46 = arith.constant 0 : index
    %86 = vector.load %arg9[%c0_45, %c0_46] : memref<24x16xf32, #tpu.memory_space<vmem>>, vector<24x16xf32>
    %cst_47 = arith.constant dense<0.000000e+00> : vector<24x512xf32>
    %87 = tpu.matmul %86, %85, %cst_47 {dimension_numbers = #tpu.dot_dimension_numbers<[1], [0], [0], [1], [0, 0, 1, 1], [], []>} : vector<24x16xf32>, vector<16x512xf32>, vector<24x512xf32> -> vector<24x512xf32>
    %88 = vector.extract_strided_slice %87 {offsets = [0, 0], sizes = [8, 256], strides = [1, 1]} : vector<24x512xf32> to vector<8x256xf32>
    %c0_48 = arith.constant 0 : index
    %c0_49 = arith.constant 0 : index
    %c0_50 = arith.constant 0 : index
    %89 = vector.load %arg10[%c0_48, %c0_49, %c0_50] : memref<2x8x256xf32, #tpu.memory_space<vmem>>, vector<1x8x256xf32>
    %90 = vector.shape_cast %89 : vector<1x8x256xf32> to vector<8x256xf32>
    %91 = vector.shape_cast %88 : vector<8x256xf32> to vector<1x8x256xf32>
    tpu.vector_store %arg10[%c0_48, %c0_49, %c0_50], %91 {strides = array<i32>} : memref<2x8x256xf32, #tpu.memory_space<vmem>>, vector<1x8x256xf32>,
    %92 = vector.extract_strided_slice %87 {offsets = [8, 0], sizes = [16, 256], strides = [1, 1]} : vector<24x512xf32> to vector<16x256xf32>
    %c0_51 = arith.constant 0 : index
    %c0_52 = arith.constant 0 : index
    %c0_53 = arith.constant 0 : index
    %93 = vector.load %arg11[%c0_51, %c0_52, %c0_53] : memref<2x16x256xf32, #tpu.memory_space<vmem>>, vector<1x16x256xf32>
    %94 = vector.shape_cast %93 : vector<1x16x256xf32> to vector<16x256xf32>
    %95 = vector.shape_cast %92 : vector<16x256xf32> to vector<1x16x256xf32>
    tpu.vector_store %arg11[%c0_51, %c0_52, %c0_53], %95 {strides = array<i32>} : memref<2x16x256xf32, #tpu.memory_space<vmem>>, vector<1x16x256xf32>,
    %96 = vector.extract_strided_slice %87 {offsets = [0, 256], sizes = [8, 256], strides = [1, 1]} : vector<24x512xf32> to vector<8x256xf32>
    %c1_54 = arith.constant 1 : index
    %c0_55 = arith.constant 0 : index
    %c0_56 = arith.constant 0 : index
    %97 = vector.load %arg10[%c1_54, %c0_55, %c0_56] : memref<2x8x256xf32, #tpu.memory_space<vmem>>, vector<1x8x256xf32>
    %98 = vector.shape_cast %97 : vector<1x8x256xf32> to vector<8x256xf32>
    %99 = vector.shape_cast %96 : vector<8x256xf32> to vector<1x8x256xf32>
    tpu.vector_store %arg10[%c1_54, %c0_55, %c0_56], %99 {strides = array<i32>} : memref<2x8x256xf32, #tpu.memory_space<vmem>>, vector<1x8x256xf32>,
    %100 = vector.extract_strided_slice %87 {offsets = [8, 256], sizes = [16, 256], strides = [1, 1]} : vector<24x512xf32> to vector<16x256xf32>
    %c1_57 = arith.constant 1 : index
    %c0_58 = arith.constant 0 : index
    %c0_59 = arith.constant 0 : index
    %101 = vector.load %arg11[%c1_57, %c0_58, %c0_59] : memref<2x16x256xf32, #tpu.memory_space<vmem>>, vector<1x16x256xf32>
    %102 = vector.shape_cast %101 : vector<1x16x256xf32> to vector<16x256xf32>
    %103 = vector.shape_cast %100 : vector<16x256xf32> to vector<1x16x256xf32>
    tpu.vector_store %arg11[%c1_57, %c0_58, %c0_59], %103 {strides = array<i32>} : memref<2x16x256xf32, #tpu.memory_space<vmem>>, vector<1x16x256xf32>,
    return
  }
  func.func @transform_0(%arg0: i32) -> (i32, i32, i32) {
    %c0_i32 = arith.constant 0 : i32
    %c0_i32_0 = arith.constant 0 : i32
    %c0_i32_1 = arith.constant 0 : i32
    %c0_i32_2 = arith.constant 0 : i32
    return %c0_i32, %c0_i32_0, %c0_i32_1 : i32, i32, i32
  }
  func.func @transform_1(%arg0: i32) -> (i32, i32, i32) {
    %c0_i32 = arith.constant 0 : i32
    %c0_i32_0 = arith.constant 0 : i32
    %c0_i32_1 = arith.constant 0 : i32
    %c0_i32_2 = arith.constant 0 : i32
    return %c0_i32, %c0_i32_0, %c0_i32_1 : i32, i32, i32
  }
  func.func @transform_2(%arg0: i32) -> (i32, i32) {
    %c0_i32 = arith.constant 0 : i32
    %c0_i32_0 = arith.constant 0 : i32
    %c0_i32_1 = arith.constant 0 : i32
    return %c0_i32, %c0_i32_0 : i32, i32
  }
  func.func @transform_3(%arg0: i32) -> (i32, i32, i32) {
    %c0_i32 = arith.constant 0 : i32
    %c0_i32_0 = arith.constant 0 : i32
    %c0_i32_1 = arith.constant 0 : i32
    %c0_i32_2 = arith.constant 0 : i32
    return %c0_i32, %c0_i32_0, %c0_i32_1 : i32, i32, i32
  }
  func.func @transform_4(%arg0: i32) -> (i32, i32) {
    %c0_i32 = arith.constant 0 : i32
    %c0_i32_0 = arith.constant 0 : i32
    %c0_i32_1 = arith.constant 0 : i32
    return %c0_i32, %c0_i32_0 : i32, i32
  }
  func.func @transform_5(%arg0: i32) -> (i32, i32) {
    %c0_i32 = arith.constant 0 : i32
    %c0_i32_0 = arith.constant 0 : i32
    %c0_i32_1 = arith.constant 0 : i32
    return %c0_i32, %c0_i32_0 : i32, i32
  }
  func.func @transform_6(%arg0: i32) -> (i32, i32) {
    %c0_i32 = arith.constant 0 : i32
    %c0_i32_0 = arith.constant 0 : i32
    %c0_i32_1 = arith.constant 0 : i32
    return %c0_i32, %c0_i32_0 : i32, i32
  }
  func.func @transform_7(%arg0: i32) -> (i32, i32) {
    %c0_i32 = arith.constant 0 : i32
    %c0_i32_0 = arith.constant 0 : i32
    %c0_i32_1 = arith.constant 0 : i32
    return %c0_i32, %c0_i32_0 : i32, i32
  }
  func.func @transform_8(%arg0: i32) -> (i32, i32) {
    %c0_i32 = arith.constant 0 : i32
    %c0_i32_0 = arith.constant 0 : i32
    %c0_i32_1 = arith.constant 0 : i32
    return %c0_i32, %c0_i32_0 : i32, i32
  }
  func.func @transform_9(%arg0: i32) -> (i32, i32, i32) {
    %c0_i32 = arith.constant 0 : i32
    %c0_i32_0 = arith.constant 0 : i32
    %c0_i32_1 = arith.constant 0 : i32
    %c0_i32_2 = arith.constant 0 : i32
    return %c0_i32, %c0_i32_0, %c0_i32_1 : i32, i32, i32
  }
  func.func @transform_10(%arg0: i32) -> (i32, i32, i32) {
    %c0_i32 = arith.constant 0 : i32
    %c0_i32_0 = arith.constant 0 : i32
    %c0_i32_1 = arith.constant 0 : i32
    %c0_i32_2 = arith.constant 0 : i32
    return %c0_i32, %c0_i32_0, %c0_i32_1 : i32, i32, i32
  }
}

</mosaic_0001>

<bundles_post_ra>
// kernel: edge_guidance_module.1
= control target key start
LH: loop header
LB: loop body
LE: loop exit
PB: predicated region body
PF: predicated region fallthrough
CT: control target
= control target key end

     0   :  { %vm57_vm0 = vcmask 523264   ;;  %v1149_v20 = vmov 0   ;;  %vm179_vm1 = vcmask 195584   ;;  %s1152_s26 = smov 127   ;;  %s1153_s27 = smov 15   ;;  %vm419_vm2 = vcmask 121856   ;;  %s1937_s2 = inlined_call_operand.vmem [shape: f32[64,256], index: 2, kind: input, shape index: {}]   ;;  %s1938_s1 = inlined_call_operand.vmem [shape: f32[2,16,64], index: 1, kind: input, shape index: {}]   ;;  %s1939_s5 = inlined_call_operand.vmem [shape: f32[16,1], index: 5, kind: input, shape index: {}]   ;;  %s1940_s0 = inlined_call_operand.vmem [shape: f32[2,8,256], index: 0, kind: input, shape index: {}]   ;;  %s1941_s4 = inlined_call_operand.vmem [shape: f32[16,24], index: 4, kind: input, shape index: {}]   ;;  %s1942_s3 = inlined_call_operand.vmem [shape: f32[9,1,512], index: 3, kind: input, shape index: {}]   ;;  %s1943_s7 = inlined_call_operand.vmem [shape: f32[16,1], index: 7, kind: input, shape index: {}]   ;;  %s1944_s6 = inlined_call_operand.vmem [shape: f32[16,144], index: 6, kind: input, shape index: {}]   ;;  %s1945_s8 = inlined_call_operand.vmem [shape: f32[24,16], index: 8, kind: input, shape index: {}]   ;;  %s1946_s9 = inlined_call_operand.vmem [shape: f32[2,8,256], index: 9, kind: output, shape index: {0}]   ;;  %s1947_s10 = inlined_call_operand.vmem [shape: f32[2,16,256], index: 10, kind: output, shape index: {1}]  }
   0x1   :  { %v55_v0 = vld [vmem:[%s1937_s2 + $0x70] sm:$0xff]  ;;  %v56_v1 = vld [vmem:[%s1937_s2 + $0x78] sm:$0xff]  ;;  %v53_v2 = vld [vmem:[%s1937_s2 + $0x60] sm:$0xff]  ;;  %1147 = vset.pattern.permute.xlu0 %v1149_v20  ;;  %1148 = vset.pattern.permute.xlu1 %v1149_v20  ;;  %s1154_s28 = smov 1   ;;  %s1156_s29 = smov 111   ;;  %vm312_vm3 = vcmask 138240  }
   0x2   :  { %72 = vmatpush.msra.mxu0 %v55_v0  ;;  %95 = vmatpush.msra.mxu1 %v56_v1  ;;  %v54_v3 = vld [vmem:[%s1937_s2 + $0x68] sm:$0xff]  ;;  %v51_v4 = vld [vmem:[%s1937_s2 + $0x50] sm:$0xff]  ;;  %v52_v5 = vld [vmem:[%s1937_s2 + $0x58] sm:$0xff]  ;;  %s1157_s30 = smov 16   ;;  %vm633_vm4 = vcmask 916480   ;;  %vm579_vm5 = vcmask 924672  }
   0x3   :  { %127 = vmatpush.msra.mxu2 %v55_v0  ;;  %1130 = vmatpush.msra.mxu3 %v56_v1  ;;  %v49_v6 = vld [vmem:[%s1937_s2 + $0x40] sm:$0xff]  ;;  %v50_v7 = vld [vmem:[%s1937_s2 + $0x48] sm:$0xff]  ;;  %v47_v8 = vld [vmem:[%s1937_s2 + $0x30] sm:$0xff]  ;;  %vm525_vm6 = vcmask 1039360   ;;  %vm687_vm7 = vcmask 908288   ;;  %vm365_vm8 = vcmask 130048  }
   0x4   :  { %73 = vmatpush.msra.mxu0 %v53_v2  ;;  %96 = vmatpush.msra.mxu1 %v54_v3  ;;  %v48_v9 = vld [vmem:[%s1937_s2 + $0x38] sm:$0xff]  ;;  %v45_v10 = vld [vmem:[%s1937_s2 + $0x20] sm:$0xff]  ;;  %v46_v11 = vld [vmem:[%s1937_s2 + $0x28] sm:$0xff]  ;;  %vm473_vm9 = vcmask 7168  }
   0x5   :  { %128 = vmatpush.msra.mxu2 %v53_v2  ;;  %1131 = vmatpush.msra.mxu3 %v54_v3  ;;  %v43_v12 = vld [vmem:[%s1937_s2 + $0x10] sm:$0xff]  ;;  %v44_v13 = vld [vmem:[%s1937_s2 + $0x18] sm:$0xff]  ;;  %v41_v14 = vld [vmem:[%s1937_s2] sm:$0xff] }
   0x6   :  { %74 = vmatpush.msra.mxu0 %v51_v4  ;;  %97 = vmatpush.msra.mxu1 %v52_v5  ;;  %v42_v15 = vld [vmem:[%s1937_s2 + $0x8] sm:$0xff]  ;;  %v39_v16 = vld [vmem:[%s1938_s1] sm:$0xff]  ;;  %v1083_v17 = vld [vmem:[%s1938_s1 + $0x10] sm:$0xff]  ;;  %s1155_s2 = smov 17  }
   0x7   :  { %129 = vmatpush.msra.mxu2 %v51_v4  ;;  %1132 = vmatpush.msra.mxu3 %v52_v5  ;;  %v1084_v18 = vld [vmem:[%s1938_s1 + $0x18] sm:$0xff]  ;;  %v40_v19 = vld [vmem:[%s1938_s1 + $0x8] sm:$0xff]  ;;  %v167_v22 = vld [vmem:[%s1939_s5] sm:$0xff] }
   0x8   :  { %75 = vmatpush.msra.mxu0 %v49_v6  ;;  %98 = vmatpush.msra.mxu1 %v50_v7  ;;  %v168_v21 = vld [vmem:[%s1939_s5 + $0x8] sm:$0xff]  ;;  %v34_v29 = vld [vmem:[%s1940_s0] sm:$0xff]  ;;  %v1078_v34 = vld [vmem:[%s1940_s0 + $0x18] sm:$0xff] }
   0x9   :  { %130 = vmatpush.msra.mxu2 %v49_v6  ;;  %1133 = vmatpush.msra.mxu3 %v50_v7  ;;  %v35_v30 = vld [vmem:[%s1940_s0 + $0x8] sm:$0xff]  ;;  %v165_v31 = vld [vmem:[%s1941_s4] sm:$0xff]  ;;  %v1077_v35 = vld [vmem:[%s1940_s0 + $0x10] sm:$0xff]  ;;  %s1150_s0 = smov 113  }
   0xa   :  { %76 = vmatpush.msra.mxu0 %v47_v8  ;;  %99 = vmatpush.msra.mxu1 %v48_v9  ;;  %v166_v36 = vld [vmem:[%s1941_s4 + $0x8] sm:$0xff]  ;;  %s1151_s4 = smov 112  }
   0xb   :  { %131 = vmatpush.msra.mxu2 %v47_v8  ;;  %1134 = vmatpush.msra.mxu3 %v48_v9  ;;  %v1452_v8 = vld [vmem:[%s1942_s3 + $0x8] sm:$0xf] }
   0xc   :  { %77 = vmatpush.msra.mxu0 %v45_v10  ;;  %100 = vmatpush.msra.mxu1 %v46_v11 }
   0xd   :  { %132 = vmatpush.msra.mxu2 %v45_v10  ;;  %1135 = vmatpush.msra.mxu3 %v46_v11 }
   0xe   :  { %78 = vmatpush.msra.mxu0 %v43_v12  ;;  %101 = vmatpush.msra.mxu1 %v44_v13 }
   0xf   :  { %133 = vmatpush.msra.mxu2 %v43_v12  ;;  %1136 = vmatpush.msra.mxu3 %v44_v13 }
  0x10   :  { %79 = vmatpush.msra.mxu0 %v41_v14  ;;  %102 = vmatpush.msra.mxu1 %v42_v15 }
  0x11   :  { %134 = vmatpush.msra.mxu2 %v41_v14  ;;  %1079 = vmatmul.msk.f32.vlgmr.msra.gmra.mxu0 %vm57_vm0, %v39_v16 }
  0x12   :  { %1081 = vmatmul.msk.f32.vlgmr.msra.gmra.mxu1 %vm57_vm0, %v39_v16  ;;  %1085 = vmatmul.msk.f32.vlgmr.msra.gmra.mxu2 %vm57_vm0, %v1083_v17 }
  0x13   :  { %150 = vmatpush.msrb.mxu0 %v56_v1  ;;  %1137 = vmatpush.msra.mxu3 %v42_v15 }
  0x14   :  { %1088 = vmatmul.msk.f32.vlgmr.msra.gmra.mxu3 %vm57_vm0, %v1084_v18  ;;  %176 = vperm.xlu0 %1147, %v168_v21  }
  0x15   :  { %151 = vmatpush.msrb.mxu0 %v54_v3 }
  0x17   :  { %152 = vmatpush.msrb.mxu0 %v52_v5 }
  0x19   :  { %153 = vmatpush.msrb.mxu0 %v50_v7 }
  0x1a   :  { %1080 = vmatmul.msk.f32.gmra.mxu0 %vm57_vm0, %v40_v19  ;;  %1082 = vmatmul.msk.f32.gmra.mxu1 %vm57_vm0, %v40_v19 }
  0x1b   :  { %1086 = vmatmul.msk.f32.gmra.mxu2 %vm57_vm0, %v1084_v18  ;;  %154 = vmatpush.msrb.mxu0 %v48_v9  ;;  %v1950_v9 = vperm.slane %v1452_v8, 1  ;;  %v1489_v18 = vld [vmem:[%s1942_s3] sm:$0xf] }
  0x1c   :  { %171 = vperm.xlu0 %1147, %v167_v22   ;;  %v1949_v19 = vperm.slane %v1489_v18, 1 }
  0x1d   :  { %155 = vmatpush.msrb.mxu0 %v46_v11 }
  0x1f   :  { %156 = vmatpush.msrb.mxu0 %v44_v13 }
  0x21   :  { %157 = vmatpush.msrb.mxu0 %v42_v15 }
  0x22   :  { %1087 = vmatmul.msk.f32.vlgmr.msrb.gmra.mxu0 %vm57_vm0, %v1083_v17 }
  0x86   :  { %v1313_v37 = vpop.permute.xlu0 %176 }
  0x8e   :  { %v81_v23 = vpop.f32.mrf.mxu0  ;;  %v172_v38 = vpop.permute.xlu0 %171 }
  0x8f   :  { %v104_v24 = vpop.f32.mrf.mxu1 }
  0x95   :  { %v136_v25 = vpop.f32.mrf.mxu2 }
  0x97   :  { %v84_v26 = vpop.f32.mrf.mxu0  ;;  %v107_v27 = vpop.f32.mrf.mxu1 }
  0x98   :  { %199 = vmatpush.msra.mxu0 %v84_v26  ;;  %222 = vmatpush.msrb.mxu1 %v107_v27  ;;  %v162_v28 = vpop.f32.mrf.mxu3 }
  0x99   :  { %268 = vmatpush.msrb.mxu3 %v162_v28 }
  0x9a   :  { %200 = vmatpush.msra.mxu0 %v81_v23  ;;  %223 = vmatpush.msrb.mxu1 %v104_v24 }
  0x9c   :  { %201 = vmatpush.msra.mxu0 %v34_v29  ;;  %224 = vmatpush.msrb.mxu1 %v35_v30 }
  0x9d   :  { %1089 = vmatmul.msk.f32.vlgmr.msra.gmra.mxu0 %vm179_vm1, %v165_v31  ;;  %1091 = vmatmul.msk.f32.vlgmr.msrb.gmra.mxu1 %vm179_vm1, %v165_v31 }
  0x9e   :  { %v139_v32 = vpop.f32.mrf.mxu2 }
  0x9f   :  { %245 = vmatpush.msrb.mxu2 %v139_v32  ;;  %v159_v33 = vpop.f32.mrf.mxu0 }
  0xa0   :  { %269 = vmatpush.msrb.mxu3 %v159_v33  ;;  %v730_v33 = vld [vmem:[%s1943_s7 + $0x8] sm:$0xff] }
  0xa1   :  { %246 = vmatpush.msrb.mxu2 %v136_v25  ;;  %v1514_v25 = vld [vmem:[%s1942_s3 + $0x1c] sm:$0xf] }
  0xa2   :  { %270 = vmatpush.msrb.mxu3 %v1078_v34  ;;  %v655_v26 = vperm.slane %v1514_v25, 0 }
  0xa3   :  { %247 = vmatpush.msrb.mxu2 %v1077_v35  ;;  %1095 = vmatmul.msk.f32.vlgmr.msrb.gmra.mxu3 %vm179_vm1, %v165_v31  ;;  %v1538_v35 = vld [vmem:[%s1942_s3 + $0x18] sm:$0xf] }
  0xa4   :  { %1093 = vmatmul.msk.f32.vlgmr.msrb.gmra.mxu2 %vm179_vm1, %v165_v31 }
  0xa5   :  { %1090 = vmatmul.msk.f32.gmra.mxu0 %vm179_vm1, %v166_v36  ;;  %1092 = vmatmul.msk.f32.gmra.mxu1 %vm179_vm1, %v166_v36 }
  0xab   :  { %1096 = vmatmul.msk.f32.gmra.mxu3 %vm179_vm1, %v166_v36 }
  0xac   :  { %1094 = vmatmul.msk.f32.gmra.mxu2 %vm179_vm1, %v166_v36  ;;  %v601_v36 = vperm.slane %v1538_v35, 0 }
 0x11a   :  { %v203_v39 = vpop.f32.mrf.mxu0  ;;  %v226_v40 = vpop.f32.mrf.mxu1 }
 0x11b   :  { %v204_v41 = vadd.f32 %v203_v39, %v172_v38  ;;  %v227_v42 = vadd.f32 %v226_v40, %v172_v38 }
 0x11d   :  { %v1315_v43 = vmax.f32 %v204_v41, 0.0  ;;  %v1317_v44 = vmax.f32 %v227_v42, 0.0 }
 0x11f   :  { %565 = vrot.lane.b32.xlu1 %v1317_v44, %s1150_s0  ;;  %563 = vrot.lane.b32.xlu0 %v1315_v43, %s1150_s0 }
 0x120   :  { %617 = vrot.lane.b32.xlu2 %v1315_v43, %s1151_s4 }
 0x122   :  { %v206_v45 = vpop.f32.mrf.mxu0  ;;  %v229_v48 = vpop.f32.mrf.mxu1 }
 0x123   :  { %v207_v46 = vadd.f32 %v206_v45, %v1313_v37  ;;  %v230_v49 = vadd.f32 %v229_v48, %v1313_v37 }
 0x125   :  { %v1344_v47 = vmax.f32 %v207_v46, 0.0  ;;  %v1353_v50 = vmax.f32 %v230_v49, 0.0  ;;  %v1557_v46 = vld [vmem:[%s1942_s3 + $0x14] sm:$0xf] }
 0x126   :  { %v272_v51 = vpop.f32.mrf.mxu3  ;;  %v547_v48 = vperm.slane %v1557_v46, 0 }
 0x127   :  { %511 = vrot.lane.b32.xlu1 %v1317_v44, %s1152_s26  ;;  %509 = vrot.lane.b32.xlu0 %v1315_v43, %s1152_s26  ;;  %v273_v52 = vadd.f32 %v272_v51, %v172_v38  ;;  %v249_v54 = vpop.f32.mrf.mxu2 }
 0x128   :  { %619 = vrot.lane.b32.xlu2 %v1317_v44, %s1151_s4  ;;  %v250_v55 = vadd.f32 %v249_v54, %v172_v38 }
 0x129   :  { %v1379_v53 = vmax.f32 %v273_v52, 0.0 }
 0x12a   :  { %v1393_v56 = vmax.f32 %v250_v55, 0.0 }
 0x12e   :  { %v275_v61 = vpop.f32.mrf.mxu3 }
 0x12f   :  { %407 = vrot.lane.b32.xlu1 %v1315_v43, %s1153_s27  ;;  %409 = vrot.lane.b32.xlu0 %v1317_v44, %s1153_s27  ;;  %v252_v57 = vpop.f32.mrf.mxu2  ;;  %v276_v62 = vadd.f32 %v275_v61, %v1313_v37 }
 0x130   :  { %461 = vrot.lane.b32.xlu2 %v1315_v43, %s1154_s28  ;;  %v253_v58 = vadd.f32 %v252_v57, %v1313_v37 }
 0x131   :  { %v1415_v0 = vmax.f32 %v276_v62, 0.0 }
 0x132   :  { %v1404_v60 = vmax.f32 %v253_v58, 0.0 }
 0x137   :  { %300 = vrot.lane.b32.xlu1 %v1315_v43, %s1155_s2  ;;  %673 = vrot.lane.b32.xlu0 %v1317_v44, %s1156_s29 }
 0x138   :  { %463 = vrot.lane.b32.xlu2 %v1317_v44, %s1154_s28 }
 0x13f   :  { %625 = vrot.lane.b32.xlu1 %v1344_v47, %s1151_s4  ;;  %571 = vrot.lane.b32.xlu0 %v1344_v47, %s1150_s0 }
 0x140   :  { %353 = vrot.lane.b32.xlu2 %v1315_v43, %s1157_s30 }
 0x147   :  { %627 = vrot.lane.b32.xlu1 %v1353_v50, %s1151_s4  ;;  %517 = vrot.lane.b32.xlu0 %v1344_v47, %s1152_s26 }
 0x148   :  { %355 = vrot.lane.b32.xlu2 %v1317_v44, %s1157_s30 }
 0x14f   :  { %573 = vrot.lane.b32.xlu1 %v1353_v50, %s1150_s0  ;;  %467 = vrot.lane.b32.xlu0 %v1344_v47, %s1154_s28 }
 0x150   :  { %671 = vrot.lane.b32.xlu2 %v1315_v43, %s1156_s29 }
 0x157   :  { %519 = vrot.lane.b32.xlu1 %v1353_v50, %s1152_s26  ;;  %306 = vrot.lane.b32.xlu0 %v1344_v47, %s1155_s2 }
 0x158   :  { %302 = vrot.lane.b32.xlu2 %v1317_v44, %s1155_s2 }
 0x15f   :  { %413 = vrot.lane.b32.xlu1 %v1344_v47, %s1153_s27  ;;  %308 = vrot.lane.b32.xlu0 %v1353_v50, %s1155_s2 }
 0x160   :  { %469 = vrot.lane.b32.xlu2 %v1353_v50, %s1154_s28 }
 0x167   :  { %359 = vrot.lane.b32.xlu1 %v1344_v47, %s1157_s30  ;;  %401 = vrot.lane.b32.xlu0 %v1379_v53, %s1153_s27 }
 0x168   :  { %415 = vrot.lane.b32.xlu2 %v1353_v50, %s1153_s27 }
 0x16f   :  { %361 = vrot.lane.b32.xlu1 %v1353_v50, %s1157_s30  ;;  %288 = vrot.lane.b32.xlu0 %v1379_v53, %s1155_s2 }
 0x170   :  { %681 = vrot.lane.b32.xlu2 %v1353_v50, %s1156_s29 }
 0x177   :  { %679 = vrot.lane.b32.xlu1 %v1344_v47, %s1156_s29  ;;  %569 = vrot.lane.b32.xlu0 %v1379_v53, %s1150_s0 }
 0x178   :  { %621 = vrot.lane.b32.xlu2 %v1393_v56, %s1151_s4 }
 0x17a   :  { %v1402_v59 = vpop.permute.xlu2 %617 }
 0x17f   :  { %513 = vrot.lane.b32.xlu1 %v1393_v56, %s1152_s26  ;;  %521 = vrot.lane.b32.xlu0 %v1404_v60, %s1152_s26 }
 0x180   :  { %567 = vrot.lane.b32.xlu2 %v1393_v56, %s1150_s0 }
 0x182   :  { %v1413_v63 = vpop.permute.xlu2 %619 }
 0x183   :  { %v634_v31 = vsel %vm633_vm4, %v1402_v59, %v1413_v63 }
 0x184   :  { %v663_v34 = vmul.f32 %v655_v26, %v634_v31 }
 0x187   :  { %455 = vrot.lane.b32.xlu1 %v1379_v53, %s1154_s28  ;;  %403 = vrot.lane.b32.xlu0 %v1415_v0, %s1153_s27 }
 0x188   :  { %629 = vrot.lane.b32.xlu2 %v1404_v60, %s1151_s4 }
 0x18a   :  { %v1423_v1 = vpop.permute.xlu2 %461 }
 0x18f   :  { %347 = vrot.lane.b32.xlu1 %v1379_v53, %s1157_s30  ;;  %349 = vrot.lane.b32.xlu0 %v1415_v0, %s1157_s30 }
 0x190   :  { %575 = vrot.lane.b32.xlu2 %v1404_v60, %s1150_s0 }
 0x191   :  { %v1431_v2 = vpop.permute.xlu1 %565  ;;  %v1433_v3 = vpop.permute.xlu0 %563 }
 0x192   :  { %v1435_v4 = vpop.permute.xlu2 %463  ;;  %v580_v39 = vsel %vm579_vm5, %v1433_v3, %v1431_v2 }
 0x193   :  { %v609_v45 = vmul.f32 %v601_v36, %v580_v39 }
 0x197   :  { %623 = vrot.lane.b32.xlu1 %v1379_v53, %s1151_s4  ;;  %631 = vrot.lane.b32.xlu0 %v1415_v0, %s1151_s4 }
 0x198   :  { %457 = vrot.lane.b32.xlu2 %v1415_v0, %s1154_s28 }
 0x199   :  { %v1443_v5 = vpop.permute.xlu1 %511  ;;  %v1445_v6 = vpop.permute.xlu0 %509 }
 0x19a   :  { %v1447_v7 = vpop.permute.xlu2 %353  ;;  %v526_v52 = vsel %vm525_vm6, %v1445_v6, %v1443_v5 }
 0x19b   :  { %v555_v58 = vmul.f32 %v547_v48, %v526_v52  ;;  %v1621_v52 = vld [vmem:[%s1942_s3 + $0x20] sm:$0xf] }
 0x19f   :  { %675 = vrot.lane.b32.xlu1 %v1393_v56, %s1156_s29  ;;  %515 = vrot.lane.b32.xlu0 %v1379_v53, %s1152_s26 }
 0x1a0   :  { %290 = vrot.lane.b32.xlu2 %v1415_v0, %s1155_s2 }
 0x1a1   :  { %v1461_v10 = vpop.permute.xlu1 %407  ;;  %v1463_v11 = vpop.permute.xlu0 %409 }
 0x1a2   :  { %v420_v12 = vsel %vm419_vm2, %v1461_v10, %v1463_v11  ;;  %v1468_v13 = vpop.permute.xlu2 %355 }
 0x1a3   :  { %v1472_v14 = vmul.f32 %v1950_v9, %v420_v12  ;;  %v1650_v9 = vld [vmem:[%s1942_s3 + $0xc] sm:$0xf] }
 0x1a7   :  { %523 = vrot.lane.b32.xlu1 %v1415_v0, %s1152_s26  ;;  %465 = vrot.lane.b32.xlu0 %v1393_v56, %s1154_s28 }
 0x1a8   :  { %577 = vrot.lane.b32.xlu2 %v1415_v0, %s1150_s0 }
 0x1a9   :  { %v1480_v15 = vpop.permute.xlu1 %300  ;;  %v1482_v16 = vpop.permute.xlu0 %673 }
 0x1aa   :  { %v1484_v17 = vpop.permute.xlu2 %671 }
 0x1ab   :  { %1957 = vst [vmem:[#allocation2_spill] sm:$0xff] %v1484_v17 }
 0x1af   :  { %683 = vrot.lane.b32.xlu1 %v1404_v60, %s1156_s29  ;;  %363 = vrot.lane.b32.xlu0 %v1404_v60, %s1157_s30 }
 0x1b0   :  { %411 = vrot.lane.b32.xlu2 %v1393_v56, %s1153_s27 }
 0x1b1   :  { %v1498_v20 = vpop.permute.xlu1 %625  ;;  %v1500_v21 = vpop.permute.xlu0 %571 }
 0x1b2   :  { %v1502_v22 = vpop.permute.xlu2 %302 }
 0x1b3   :  { %1958 = vst [vmem:[#allocation3_spill] sm:$0xff] %v1502_v22  ;;  %v313_v23 = vsel %vm312_vm3, %v1480_v15, %v1502_v22 }
 0x1b4   :  { %v1509_v24 = vmul.f32 %v1949_v19, %v313_v23  ;;  %v1951_v23 = vperm.slane %v1452_v8, 0  ;;  %v1645_v19 = vld [vmem:[%s1944_s6 + $0x8] sm:$0xff] }
 0x1b7   :  { %417 = vrot.lane.b32.xlu1 %v1404_v60, %s1153_s27  ;;  %677 = vrot.lane.b32.xlu0 %v1379_v53, %s1156_s29 }
 0x1b8   :  { %471 = vrot.lane.b32.xlu2 %v1404_v60, %s1154_s28 }
 0x1b9   :  { %v628_v27 = vpop.permute.xlu1 %627  ;;  %v1523_v28 = vpop.permute.xlu0 %517 }
 0x1ba   :  { %v637_v29 = vsel %vm633_vm4, %v1498_v20, %v628_v27  ;;  %v1527_v30 = vpop.permute.xlu2 %469 }
 0x1bb   :  { %v667_v32 = vmul.f32 %v655_v26, %v637_v29 }
 0x1bd   :  { %747 = vmatpush.msrb.mxu0 %v667_v32 }
 0x1bf   :  { %685 = vrot.lane.b32.xlu1 %v1415_v0, %s1156_s29  ;;  %738 = vperm.xlu0 %1147, %v730_v33  }
 0x1c0   :  { %357 = vrot.lane.b32.xlu2 %v1393_v56, %s1157_s30  ;;  %748 = vmatpush.msrb.mxu0 %v663_v34 }
 0x1c1   :  { %v574_v37 = vpop.permute.xlu1 %573  ;;  %v1545_v38 = vpop.permute.xlu0 %467 }
 0x1c2   :  { %v583_v40 = vsel %vm579_vm5, %v1500_v21, %v574_v37  ;;  %v1552_v41 = vpop.permute.xlu2 %415 }
 0x1c3   :  { %v613_v42 = vmul.f32 %v601_v36, %v583_v40  ;;  %v656_v36 = vperm.slane %v1514_v25, 1 }
 0x1c5   :  { %749 = vmatpush.msrb.mxu0 %v613_v42 }
 0x1c7   :  { %310 = vrot.lane.b32.xlu1 %v1404_v60, %s1155_s2  ;;  %750 = vmatpush.msrb.mxu0 %v609_v45 }
 0x1c8   :  { %304 = vrot.lane.b32.xlu2 %v1393_v56, %s1155_s2 }
 0x1c9   :  { %v1564_v49 = vpop.permute.xlu1 %519  ;;  %v1566_v51 = vpop.permute.xlu0 %306 }
 0x1ca   :  { %v529_v54 = vsel %vm525_vm6, %v1523_v28, %v1564_v49  ;;  %v1574_v55 = vpop.permute.xlu2 %681 }
 0x1cb   :  { %v559_v57 = vmul.f32 %v547_v48, %v529_v54  ;;  %v709_v54 = vperm.slane %v1621_v52, 0 }
 0x1cd   :  { %751 = vmatpush.msrb.mxu0 %v559_v57 }
 0x1cf   :  { %752 = vmatpush.msrb.mxu0 %v555_v58  ;;  %v602_v58 = vperm.slane %v1538_v35, 1 }
 0x1d1   :  { %v1576_v61 = vpop.permute.xlu1 %413  ;;  %v1578_v62 = vpop.permute.xlu0 %308  ;;  %753 = vmatpush.msrb.mxu0 %v1344_v47  ;;  %v1948_v47 = vperm.slane %v1489_v18, 0 }
 0x1d2   :  { %1959 = vst [vmem:[#allocation4_spill] sm:$0xff] %v1578_v62  ;;  %v1581_v12 = vpop.permute.xlu2 %621 }
 0x1d3   :  { %754 = vmatpush.msrb.mxu0 %v1315_v43 }
 0x1d9   :  { %v1585_v26 = vpop.permute.xlu1 %359  ;;  %v1587_v29 = vpop.permute.xlu0 %401 }
 0x1da   :  { %v434_v31 = vsel %vm419_vm2, %v1587_v29, %v1461_v10  ;;  %v1592_v32 = vpop.permute.xlu2 %567  ;;  %v635_v10 = vsel %vm633_vm4, %v1413_v63, %v1581_v12 }
 0x1db   :  { %v1596_v33 = vmul.f32 %v1951_v23, %v434_v31 }
 0x1e1   :  { %v1599_v34 = vpop.permute.xlu1 %361  ;;  %v1601_v43 = vpop.permute.xlu0 %288 }
 0x1e2   :  { %1960 = vst [vmem:[#allocation5_spill] sm:$0xff] %v1601_v43  ;;  %v327_v39 = vsel %vm312_vm3, %v1601_v43, %v1480_v15  ;;  %v1607_v40 = vpop.permute.xlu2 %629  ;;  %v664_v15 = vmul.f32 %v656_v36, %v635_v10  ;;  %v1962_v43 = vperm.slane %v1452_v8, 0 }
 0x1e3   :  { %v1614_v42 = vmul.f32 %v1948_v47, %v327_v39  ;;  %v638_v45 = vsel %vm633_vm4, %v628_v27, %v1607_v40  ;;  %v688_v27 = vsel %vm687_vm7, %v1484_v17, %v1482_v16  ;;  %v581_v39 = vsel %vm579_vm5, %v1431_v2, %v1592_v32 }
 0x1e4   :  { %v668_v48 = vmul.f32 %v656_v36, %v638_v45  ;;  %v610_v47 = vmul.f32 %v602_v58, %v581_v39  ;;  %v548_v2 = vperm.slane %v1557_v46, 1 }
 0x1e6   :  { %793 = vmatpush.msra.mxu2 %v668_v48 }
 0x1e8   :  { %794 = vmatpush.msra.mxu2 %v664_v15  ;;  %v717_v15 = vmul.f32 %v709_v54, %v688_v27 }
 0x1e9   :  { %v1624_v63 = vpop.permute.xlu1 %679  ;;  %v1626_v57 = vpop.permute.xlu0 %569 }
 0x1ea   :  { %1961 = vst [vmem:[#allocation6_spill] sm:$0xff] %v1624_v63  ;;  %v691_v31 = vsel %vm687_vm7, %v1624_v63, %v1574_v55  ;;  %v1635_v36 = vpop.permute.xlu2 %575 }
 0x1eb   :  { %v721_v10 = vmul.f32 %v709_v54, %v691_v31  ;;  %v584_v45 = vsel %vm579_vm5, %v574_v37, %v1635_v36  ;;  %v493_v37 = vperm.slane %v1650_v9, 0 }
 0x1ec   :  { %v614_v48 = vmul.f32 %v602_v58, %v584_v45 }
 0x1ed   :  { %784 = vmatpush.msra.mxu1 %v721_v10 }
 0x1ee   :  { %795 = vmatpush.msra.mxu2 %v614_v48 }
 0x1ef   :  { %785 = vmatpush.msra.mxu1 %v717_v15  ;;  %v1674_v15 = vld [vmem:[%s1944_s6 + $0x18] sm:$0xff] }
 0x1f0   :  { %796 = vmatpush.msra.mxu2 %v610_v47  ;;  %1104 = vmatmul.msk.f32.vlgmr.msra.gmra.mxu1 %vm365_vm8, %v1645_v19 }
 0x1f1   :  { %v1656_v54 = vpop.permute.xlu1 %513  ;;  %v1658_v27 = vpop.permute.xlu0 %521 }
 0x1f2   :  { %v527_v58 = vsel %vm525_vm6, %v1443_v5, %v1656_v54  ;;  %v530_v31 = vsel %vm525_vm6, %v1564_v49, %v1658_v27  ;;  %v1666_v39 = vpop.permute.xlu2 %457  ;;  %v477_v5 = vsel %vm473_vm9, %v1545_v38, %v1527_v30  ;;  %v494_v49 = vperm.slane %v1650_v9, 1 }
 0x1f3   :  { %v560_v47 = vmul.f32 %v548_v2, %v530_v31  ;;  %v489_v10 = vsel %vm473_vm9, %v1666_v39, %v1545_v38  ;;  %v556_v48 = vmul.f32 %v548_v2, %v527_v58  ;;  %v474_v58 = vsel %vm473_vm9, %v1423_v1, %v1435_v4 }
 0x1f4   :  { %v505_v45 = vmul.f32 %v493_v37, %v489_v10  ;;  %v502_v23 = vmul.f32 %v494_v49, %v474_v58 }
 0x1f5   :  { %797 = vmatpush.msra.mxu2 %v560_v47 }
 0x1f6   :  { %755 = vmatpush.msrb.mxu0 %v505_v45  ;;  %v506_v45 = vmul.f32 %v494_v49, %v477_v5  ;;  %v1963_v5 = vperm.slane %v1452_v8, 1 }
 0x1f7   :  { %798 = vmatpush.msra.mxu2 %v556_v48 }
 0x1f8   :  { %1105 = vmatmul.msk.f32.gmra.mxu1 %vm365_vm8, %v1674_v15 }
 0x1f9   :  { %v1682_v31 = vpop.permute.xlu1 %455  ;;  %v1684_v2 = vpop.permute.xlu0 %403  ;;  %799 = vmatpush.msra.mxu2 %v1353_v50  ;;  %v423_v50 = vsel %vm419_vm2, %v1576_v61, %v1552_v41 }
 0x1fa   :  { %v488_v47 = vsel %vm473_vm9, %v1682_v31, %v1423_v1  ;;  %v435_v38 = vsel %vm419_vm2, %v1684_v2, %v1576_v61  ;;  %v1696_v10 = vpop.permute.xlu2 %290  ;;  %v1707_v1 = vld [vmem:[%s1942_s3 + $0x4] sm:$0xf]  ;;  %v369_v61 = vsel %vm365_vm8, %v1585_v26, %v1599_v34 }
 0x1fb   :  { %v501_v48 = vmul.f32 %v493_v37, %v488_v47  ;;  %800 = vmatpush.msra.mxu2 %v1317_v44  ;;  %v451_v22 = vmul.f32 %v1962_v43, %v435_v38  ;;  %v452_v37 = vmul.f32 %v1963_v5, %v423_v50  ;;  %v385_v44 = vperm.slane %v1707_v1, 0 }
 0x1fc   :  { %v386_v43 = vperm.slane %v1707_v1, 1  ;;  %v328_v50 = vsel %vm312_vm3, %v1696_v10, %v1566_v51 }
 0x1fd   :  { %756 = vmatpush.msrb.mxu0 %v501_v48  ;;  %801 = vmatpush.msra.mxu2 %v506_v45 }
 0x1fe   :  { %v398_v45 = vmul.f32 %v386_v43, %v369_v61  ;;  %v1965_v61 = vperm.slane %v1489_v18, 0 }
 0x1ff   :  { %757 = vmatpush.msrb.mxu0 %v451_v22  ;;  %802 = vmatpush.msra.mxu2 %v502_v23  ;;  %v366_v22 = vsel %vm365_vm8, %v1447_v7, %v1468_v13 }
 0x200   :  { %v394_v5 = vmul.f32 %v386_v43, %v366_v22 }
 0x201   :  { %v1716_v49 = vpop.permute.xlu1 %347  ;;  %v1718_v58 = vpop.permute.xlu0 %349  ;;  %758 = vmatpush.msrb.mxu0 %v1596_v33  ;;  %803 = vmatpush.msra.mxu2 %v452_v37  ;;  %v316_v33 = vsel %vm312_vm3, %v1566_v51, %v1578_v62  ;;  %v658_v62 = vperm.slane %v1514_v25, 3  ;;  %v442_v51 = vperm.slane %v1452_v8, 3 }
 0x202   :  { %v380_v23 = vsel %vm365_vm8, %v1716_v49, %v1447_v7  ;;  %v381_v47 = vsel %vm365_vm8, %v1718_v58, %v1585_v26  ;;  %v578_v38 = vpop.permute.xlu2 %577  ;;  %v1964_v7 = vperm.slane %v1489_v18, 1 }
 0x203   :  { %v397_v48 = vmul.f32 %v385_v44, %v381_v47  ;;  %804 = vmatpush.msra.mxu2 %v1472_v14  ;;  %v393_v37 = vmul.f32 %v385_v44, %v380_v23  ;;  %v343_v47 = vmul.f32 %v1965_v61, %v328_v50  ;;  %v657_v14 = vperm.slane %v1514_v25, 2  ;;  %v1747_v44 = vld [vmem:[%s1944_s6] sm:$0xff] }
 0x204   :  { %v344_v26 = vmul.f32 %v1964_v7, %v316_v33  ;;  %v585_v50 = vsel %vm579_vm5, %v1635_v36, %v578_v38 }
 0x205   :  { %759 = vmatpush.msrb.mxu0 %v397_v48  ;;  %805 = vmatpush.msra.mxu2 %v398_v45 }
 0x207   :  { %760 = vmatpush.msrb.mxu0 %v393_v37  ;;  %806 = vmatpush.msra.mxu2 %v394_v5 }
 0x209   :  { %v624_v63 = vpop.permute.xlu1 %623  ;;  %v632_v17 = vpop.permute.xlu0 %631  ;;  %761 = vmatpush.msrb.mxu0 %v343_v47  ;;  %807 = vmatpush.msra.mxu2 %v344_v26 }
 0x20a   :  { %v636_v43 = vsel %vm633_vm4, %v1581_v12, %v624_v63  ;;  %v639_v22 = vsel %vm633_vm4, %v1607_v40, %v632_v17  ;;  %v651_v25 = vsel %vm633_vm4, %v632_v17, %v1498_v20  ;;  %v1755_v23 = vpop.permute.xlu2 %411  ;;  %v650_v45 = vsel %vm633_vm4, %v624_v63, %v1402_v59 }
 0x20b   :  { %v669_v48 = vmul.f32 %v657_v14, %v639_v22  ;;  %v670_v33 = vmul.f32 %v658_v62, %v651_v25  ;;  %762 = vmatpush.msrb.mxu0 %v1614_v42  ;;  %v422_v12 = vsel %vm419_vm2, %v1755_v23, %v1587_v29  ;;  %808 = vmatpush.msra.mxu2 %v1509_v24  ;;  %v603_v17 = vperm.slane %v1538_v35, 2 }
 0x20c   :  { %763 = vmatmul.f32.vlgmr.msrb.gmra.mxu0 %v1747_v44  ;;  %v597_v59 = vsel %vm579_vm5, %v578_v38, %v1500_v21  ;;  %v665_v20 = vmul.f32 %v657_v14, %v636_v43  ;;  %v1772_v40 = vmul.f32 %v442_v51, %v422_v12  ;;  %809 = vmatmul.f32.vlgmr.msra.gmra.mxu2 %v1747_v44  ;;  %v604_v42 = vperm.slane %v1538_v35, 3 }
 0x20d   :  { %839 = vmatpush.msrb.mxu1 %v669_v48  ;;  %v582_v24 = vsel %vm579_vm5, %v1592_v32, %v1626_v57  ;;  %v666_v29 = vmul.f32 %v658_v62, %v650_v45  ;;  %885 = vmatpush.msra.mxu0 %v670_v33  ;;  %v596_v21 = vsel %vm579_vm5, %v1626_v57, %v1433_v3  ;;  %v1787_v62 = vld [vmem:[%s1944_s6 + $0x10] sm:$0xff]  ;;  %v729_v3 = vld [vmem:[%s1943_s7] sm:$0xff]  ;;  %v549_v32 = vperm.slane %v1557_v46, 2 }
 0x20e   :  { %v615_v63 = vmul.f32 %v603_v17, %v585_v50  ;;  %v616_v36 = vmul.f32 %v604_v42, %v597_v59  ;;  %v611_v38 = vmul.f32 %v603_v17, %v582_v24  ;;  %v612_v35 = vmul.f32 %v604_v42, %v596_v21  ;;  %733 = vperm.xlu1 %1148, %v729_v3  }
 0x20f   :  { %840 = vmatpush.msrb.mxu1 %v665_v20  ;;  %886 = vmatpush.msra.mxu0 %v666_v29  ;;  %v550_v57 = vperm.slane %v1557_v46, 3  ;;  %v495_v46 = vperm.slane %v1650_v9, 2  ;;  %v387_v50 = vperm.slane %v1707_v1, 2 }
 0x211   :  { %v1782_v5 = vpop.permute.xlu1 %675  ;;  %v516_v37 = vpop.permute.xlu0 %515  ;;  %841 = vmatpush.msrb.mxu1 %v615_v63  ;;  %887 = vmatpush.msra.mxu0 %v616_v36 }
 0x212   :  { %v528_v61 = vsel %vm525_vm6, %v1656_v54, %v516_v37  ;;  %v542_v47 = vsel %vm525_vm6, %v516_v37, %v1445_v6  ;;  %v472_v33 = vpop.permute.xlu2 %471  ;;  %v496_v54 = vperm.slane %v1650_v9, 3  ;;  %v689_v9 = vsel %vm687_vm7, %v1482_v16, %v1782_v5 }
 0x213   :  { %842 = vmatpush.msrb.mxu1 %v611_v38  ;;  %888 = vmatpush.msra.mxu0 %v612_v35  ;;  %v557_v45 = vmul.f32 %v549_v32, %v528_v61  ;;  %v558_v48 = vmul.f32 %v550_v57, %v542_v47  ;;  %v478_v6 = vsel %vm473_vm9, %v1527_v30, %v472_v33  ;;  %v388_v35 = vperm.slane %v1707_v1, 3 }
 0x214   :  { %766 = vmatmul.f32.gmra.mxu0 %v1787_v62  ;;  %812 = vmatmul.f32.gmra.mxu2 %v1787_v62  ;;  %v507_v20 = vmul.f32 %v495_v46, %v478_v6  ;;  %v711_v1 = vperm.slane %v1621_v52, 2 }
 0x219   :  { %v524_v7 = vpop.permute.xlu1 %523  ;;  %v466_v26 = vpop.permute.xlu0 %465 }
 0x21a   :  { %v531_v14 = vsel %vm525_vm6, %v1658_v27, %v524_v7  ;;  %v543_v43 = vsel %vm525_vm6, %v524_v7, %v1523_v28  ;;  %v710_v27 = vperm.slane %v1621_v52, 1  ;;  %v479_v28 = vsel %vm473_vm9, %v472_v33, %v1666_v39  ;;  %v358_v21 = vpop.permute.xlu2 %357 }
 0x21b   :  { %v561_v22 = vmul.f32 %v549_v32, %v531_v14  ;;  %v562_v25 = vmul.f32 %v550_v57, %v543_v43  ;;  %v475_v30 = vsel %vm473_vm9, %v1435_v4, %v466_v26  ;;  %v476_v42 = vsel %vm473_vm9, %v466_v26, %v1682_v31  ;;  %v1967_v57 = vld [vmem:[#allocation6_spill] sm:$0xff] }
 0x21c   :  { %v718_v16 = vmul.f32 %v710_v27, %v689_v9  ;;  %v503_v29 = vmul.f32 %v495_v46, %v475_v30  ;;  %v504_v4 = vmul.f32 %v496_v54, %v476_v42  ;;  %v334_v43 = vperm.slane %v1489_v18, 3  ;;  %v1970_v46 = vld [vmem:[#allocation4_spill] sm:$0xff] }
 0x21d   :  { %843 = vmatpush.msrb.mxu1 %v561_v22  ;;  %889 = vmatpush.msra.mxu0 %v562_v25  ;;  %v1968_v25 = vld [vmem:[#allocation3_spill] sm:$0xff] }
 0x21f   :  { %844 = vmatpush.msrb.mxu1 %v557_v45  ;;  %890 = vmatpush.msra.mxu0 %v558_v48  ;;  %v1969_v48 = vld [vmem:[#allocation5_spill] sm:$0xff] }
 0x221   :  { %v684_v12 = vpop.permute.xlu1 %683  ;;  %v364_v17 = vpop.permute.xlu0 %363  ;;  %845 = vmatpush.msrb.mxu1 %v1404_v60  ;;  %891 = vmatpush.msra.mxu0 %v1415_v0  ;;  %v508_v0 = vmul.f32 %v496_v54, %v479_v28 }
 0x222   :  { %v692_v59 = vsel %vm687_vm7, %v1574_v55, %v684_v12  ;;  %v370_v39 = vsel %vm365_vm8, %v1599_v34, %v364_v17  ;;  %v441_v55 = vperm.slane %v1452_v8, 2  ;;  %v371_v38 = vsel %vm365_vm8, %v364_v17, %v1718_v58  ;;  %v305_v14 = vpop.permute.xlu2 %304 }
 0x223   :  { %v722_v60 = vmul.f32 %v710_v27, %v692_v59  ;;  %v399_v24 = vmul.f32 %v387_v50, %v370_v39  ;;  %846 = vmatpush.msrb.mxu1 %v1393_v56  ;;  %892 = vmatpush.msra.mxu0 %v1379_v53  ;;  %v421_v56 = vsel %vm419_vm2, %v1463_v11, %v1755_v23 }
 0x224   :  { %v449_v37 = vmul.f32 %v441_v55, %v421_v56  ;;  %v367_v11 = vsel %vm365_vm8, %v1468_v13, %v358_v21  ;;  %v314_v45 = vsel %vm312_vm3, %v1968_v25, %v305_v14  ;;  %v315_v33 = vsel %vm312_vm3, %v305_v14, %v1969_v48 }
 0x225   :  { %830 = vmatpush.msra.mxu3 %v722_v60  ;;  %847 = vmatpush.msrb.mxu1 %v507_v20  ;;  %v395_v8 = vmul.f32 %v387_v50, %v367_v11  ;;  %v342_v50 = vmul.f32 %v334_v43, %v315_v33 }
 0x226   :  { %893 = vmatpush.msra.mxu0 %v508_v0  ;;  %v941_v0 = vld [vmem:[%s1945_s8 + $0x10] sm:$0xff] }
 0x227   :  { %831 = vmatpush.msra.mxu3 %v718_v16  ;;  %848 = vmatpush.msrb.mxu1 %v503_v29 }
 0x228   :  { %894 = vmatpush.msra.mxu0 %v504_v4  ;;  %1106 = vmatmul.msk.f32.vlgmr.msra.gmra.mxu3 %vm365_vm8, %v1645_v19 }
 0x229   :  { %v418_v34 = vpop.permute.xlu1 %417  ;;  %v678_v23 = vpop.permute.xlu0 %677 }
 0x22a   :  { %v424_v53 = vsel %vm419_vm2, %v1552_v41, %v418_v34  ;;  %v425_v31 = vsel %vm419_vm2, %v418_v34, %v1684_v2  ;;  %v368_v41 = vsel %vm365_vm8, %v358_v21, %v1716_v49  ;;  %v400_v2 = vmul.f32 %v388_v35, %v371_v38  ;;  %v1966_v49 = vld [vmem:[#allocation2_spill] sm:$0xff] }
 0x22b   :  { %v453_v63 = vmul.f32 %v441_v55, %v424_v53  ;;  %v454_v36 = vmul.f32 %v442_v51, %v425_v31  ;;  %v396_v58 = vmul.f32 %v388_v35, %v368_v41  ;;  %v712_v51 = vperm.slane %v1621_v52, 3 }
 0x22c   :  { %v690_v13 = vsel %vm687_vm7, %v1782_v5, %v678_v23  ;;  %v704_v32 = vsel %vm687_vm7, %v678_v23, %v1966_v49  ;;  %v333_v5 = vperm.slane %v1489_v18, 2 }
 0x22d   :  { %849 = vmatpush.msrb.mxu1 %v453_v63  ;;  %895 = vmatpush.msra.mxu0 %v454_v36  ;;  %v719_v47 = vmul.f32 %v711_v1, %v690_v13  ;;  %v720_v52 = vmul.f32 %v712_v51, %v704_v32 }
 0x22f   :  { %850 = vmatpush.msrb.mxu1 %v449_v37  ;;  %896 = vmatpush.msra.mxu0 %v1772_v40 }
 0x230   :  { %1107 = vmatmul.msk.f32.gmra.mxu3 %vm365_vm8, %v1674_v15 }
 0x231   :  { %v686_v3 = vpop.permute.xlu1 %685  ;;  %851 = vmatpush.msrb.mxu1 %v399_v24  ;;  %897 = vmatpush.msra.mxu0 %v400_v2  ;;  %v739_v9 = vpop.permute.xlu0 %738 }
 0x232   :  { %v693_v40 = vsel %vm687_vm7, %v684_v12, %v686_v3  ;;  %v705_v7 = vsel %vm687_vm7, %v686_v3, %v1967_v57 }
 0x233   :  { %v723_v26 = vmul.f32 %v711_v1, %v693_v40  ;;  %v724_v61 = vmul.f32 %v712_v51, %v705_v7  ;;  %852 = vmatpush.msrb.mxu1 %v395_v8  ;;  %898 = vmatpush.msra.mxu0 %v396_v58 }
 0x235   :  { %876 = vmatpush.msrb.mxu3 %v723_v26  ;;  %922 = vmatpush.msrb.mxu2 %v724_v61 }
 0x237   :  { %877 = vmatpush.msrb.mxu3 %v719_v47  ;;  %923 = vmatpush.msrb.mxu2 %v720_v52 }
 0x238   :  { %1108 = vmatmul.msk.f32.vlgmr.msrb.gmra.mxu3 %vm365_vm8, %v1645_v19  ;;  %1110 = vmatmul.msk.f32.vlgmr.msrb.gmra.mxu2 %vm365_vm8, %v1645_v19  ;;  %v341_v19 = vmul.f32 %v333_v5, %v314_v45 }
 0x239   :  { %v311_v22 = vpop.permute.xlu1 %310 }
 0x23a   :  { %v317_v54 = vsel %vm312_vm3, %v1970_v46, %v311_v22  ;;  %v318_v6 = vsel %vm312_vm3, %v311_v22, %v1696_v10 }
 0x23b   :  { %v345_v27 = vmul.f32 %v333_v5, %v317_v54  ;;  %v346_v28 = vmul.f32 %v334_v43, %v318_v6 }
 0x23d   :  { %853 = vmatpush.msrb.mxu1 %v345_v27  ;;  %899 = vmatpush.msra.mxu0 %v346_v28 }
 0x23f   :  { %854 = vmatpush.msrb.mxu1 %v341_v19  ;;  %900 = vmatpush.msra.mxu0 %v342_v50 }
 0x240   :  { %855 = vmatmul.f32.vlgmr.msrb.gmra.mxu1 %v1747_v44  ;;  %901 = vmatmul.f32.vlgmr.msra.gmra.mxu0 %v1747_v44 }
 0x241   :  { %1109 = vmatmul.msk.f32.gmra.mxu3 %vm365_vm8, %v1674_v15  ;;  %1111 = vmatmul.msk.f32.gmra.mxu2 %vm365_vm8, %v1674_v15  ;;  %v939_v15 = vld [vmem:[%s1945_s8] sm:$0xff] }
 0x248   :  { %858 = vmatmul.f32.gmra.mxu1 %v1787_v62  ;;  %904 = vmatmul.f32.gmra.mxu0 %v1787_v62  ;;  %v940_v62 = vld [vmem:[%s1945_s8 + $0x8] sm:$0xff] }
 0x26d   :  { %v787_v18 = vpop.f32.mrf.mxu1 }
 0x275   :  { %v790_v59 = vpop.f32.mrf.mxu1 }
 0x280   :  { %v734_v12 = vpop.permute.xlu1 %733 }
 0x289   :  { %v764_v10 = vpop.f32.mrf.mxu0 }
 0x28a   :  { %v765_v17 = vadd.f32 %v764_v10, %v734_v12 }
 0x28c   :  { %v788_v20 = vadd.f32 %v787_v18, %v765_v17 }
 0x28e   :  { %v931_v60 = vmax.f32 %v788_v20, 0.0 }
 0x28f   :  { %v810_v24 = vpop.f32.mrf.mxu2 }
 0x290   :  { %v811_v4 = vadd.f32 %v810_v24, %v734_v12 }
 0x291   :  { %v767_v30 = vpop.f32.mrf.mxu0 }
 0x292   :  { %v768_v39 = vadd.f32 %v767_v30, %v739_v9 }
 0x294   :  { %v791_v44 = vadd.f32 %v790_v59, %v768_v39 }
 0x296   :  { %v935_v42 = vmax.f32 %v791_v44, 0.0 }
 0x297   :  { %v813_v29 = vpop.f32.mrf.mxu2 }
 0x298   :  { %965 = vmatpush.msra.mxu3 %v935_v42  ;;  %v814_v55 = vadd.f32 %v813_v29, %v739_v9 }
 0x29a   :  { %966 = vmatpush.msra.mxu3 %v931_v60 }
 0x29b   :  { %1112 = vmatmul.msk.f32.vlgmr.msra.gmra.mxu3 %vm365_vm8, %v939_v15 }
 0x2a3   :  { %1113 = vmatmul.msk.f32.gmra.mxu3 %vm365_vm8, %v940_v62 }
 0x2ab   :  { %v833_v16 = vpop.f32.mrf.mxu3  ;;  %1114 = vmatmul.msk.f32.gmra.mxu3 %vm365_vm8, %v941_v0 }
 0x2ac   :  { %v834_v53 = vadd.f32 %v833_v16, %v811_v4 }
 0x2ae   :  { %v932_v21 = vmax.f32 %v834_v53, 0.0 }
 0x2b3   :  { %v836_v34 = vpop.f32.mrf.mxu3 }
 0x2b4   :  { %v837_v56 = vadd.f32 %v836_v34, %v814_v55 }
 0x2b6   :  { %v936_v31 = vmax.f32 %v837_v56, 0.0 }
 0x2b8   :  { %991 = vmatpush.msra.mxu1 %v936_v31 }
 0x2ba   :  { %992 = vmatpush.msra.mxu1 %v932_v21 }
 0x2bb   :  { %v879_v63 = vpop.f32.mrf.mxu3  ;;  %v925_v36 = vpop.f32.mrf.mxu2  ;;  %1115 = vmatmul.msk.f32.vlgmr.msra.gmra.mxu1 %vm365_vm8, %v939_v15 }
 0x2bd   :  { %v856_v38 = vpop.f32.mrf.mxu1  ;;  %v902_v37 = vpop.f32.mrf.mxu0 }
 0x2be   :  { %v857_v35 = vadd.f32 %v856_v38, %v734_v12  ;;  %v903_v11 = vadd.f32 %v902_v37, %v734_v12 }
 0x2c0   :  { %v880_v51 = vadd.f32 %v879_v63, %v857_v35  ;;  %v926_v3 = vadd.f32 %v925_v36, %v903_v11 }
 0x2c2   :  { %v933_v57 = vmax.f32 %v880_v51, 0.0  ;;  %v934_v7 = vmax.f32 %v926_v3, 0.0 }
 0x2c3   :  { %1116 = vmatmul.msk.f32.gmra.mxu1 %vm365_vm8, %v940_v62 }
 0x2c4   :  { %v882_v41 = vpop.f32.mrf.mxu3  ;;  %v928_v2 = vpop.f32.mrf.mxu2 }
 0x2c5   :  { %v859_v23 = vpop.f32.mrf.mxu1  ;;  %v905_v8 = vpop.f32.mrf.mxu0 }
 0x2c6   :  { %v860_v58 = vadd.f32 %v859_v23, %v739_v9  ;;  %v906_v1 = vadd.f32 %v905_v8, %v739_v9 }
 0x2c8   :  { %v883_v13 = vadd.f32 %v882_v41, %v860_v58  ;;  %v929_v49 = vadd.f32 %v928_v2, %v906_v1 }
 0x2ca   :  { %v937_v32 = vmax.f32 %v883_v13, 0.0  ;;  %v938_v40 = vmax.f32 %v929_v49, 0.0 }
 0x2cb   :  { %1117 = vmatmul.msk.f32.gmra.mxu1 %vm365_vm8, %v941_v0 }
 0x2cc   :  { %1017 = vmatpush.msra.mxu2 %v937_v32  ;;  %1043 = vmatpush.msrb.mxu3 %v938_v40 }
 0x2ce   :  { %1018 = vmatpush.msra.mxu2 %v933_v57  ;;  %1044 = vmatpush.msrb.mxu3 %v934_v7 }
 0x2cf   :  { %1118 = vmatmul.msk.f32.vlgmr.msra.gmra.mxu2 %vm365_vm8, %v939_v15  ;;  %1121 = vmatmul.msk.f32.vlgmr.msrb.gmra.mxu3 %vm365_vm8, %v939_v15 }
 0x2d7   :  { %1119 = vmatmul.msk.f32.gmra.mxu2 %vm365_vm8, %v940_v62  ;;  %1122 = vmatmul.msk.f32.gmra.mxu3 %vm365_vm8, %v940_v62 }
 0x2df   :  { %1120 = vmatmul.msk.f32.gmra.mxu2 %vm365_vm8, %v941_v0  ;;  %1123 = vmatmul.msk.f32.gmra.mxu3 %vm365_vm8, %v941_v0 }
 0x31e   :  { %v968_v26 = vpop.f32.mrf.mxu3 }
 0x31f   :  { %1055 = vst [vmem:[%s1946_s9] sm:$0xff] %v968_v26 }
 0x326   :  { %v971_v61 = vpop.f32.mrf.mxu3 }
 0x327   :  { %1057 = vst [vmem:[%s1947_s10] sm:$0xff] %v971_v61 }
 0x32e   :  { %v974_v47 = vpop.f32.mrf.mxu3 }
 0x32f   :  { %1059 = vst [vmem:[%s1947_s10 + $0x10] sm:$0xff] %v974_v47 }
 0x338   :  { %v994_v52 = vpop.f32.mrf.mxu1 }
 0x339   :  { %1056 = vst [vmem:[%s1946_s9 + $0x8] sm:$0xff] %v994_v52 }
 0x340   :  { %v997_v14 = vpop.f32.mrf.mxu1 }
 0x341   :  { %1058 = vst [vmem:[%s1947_s10 + $0x8] sm:$0xff] %v997_v14 }
 0x348   :  { %v1000_v5 = vpop.f32.mrf.mxu1 }
 0x349   :  { %1060 = vst [vmem:[%s1947_s10 + $0x18] sm:$0xff] %v1000_v5 }
 0x352   :  { %v1020_v43 = vpop.f32.mrf.mxu2  ;;  %v1046_v22 = vpop.f32.mrf.mxu3 }
 0x353   :  { %1124 = vst [vmem:[%s1946_s9 + $0x10] sm:$0xff] %v1020_v43 }
 0x354   :  { %1125 = vst [vmem:[%s1946_s9 + $0x18] sm:$0xff] %v1046_v22 }
 0x35a   :  { %v1023_v25 = vpop.f32.mrf.mxu2  ;;  %v1049_v45 = vpop.f32.mrf.mxu3 }
 0x35b   :  { %1126 = vst [vmem:[%s1947_s10 + $0x20] sm:$0xff] %v1023_v25 }
 0x35c   :  { %1127 = vst [vmem:[%s1947_s10 + $0x28] sm:$0xff] %v1049_v45 }
 0x362   :  { %v1026_v48 = vpop.f32.mrf.mxu2  ;;  %v1052_v33 = vpop.f32.mrf.mxu3 }
 0x363   :  { %1128 = vst [vmem:[%s1947_s10 + $0x30] sm:$0xff] %v1026_v48 }
 0x364   :  { %1129 = vst [vmem:[%s1947_s10 + $0x38] sm:$0xff] %v1052_v33 }

</bundles_post_ra>
